<compile_context>
chip_gen: v7x
topology: tpu7x:2x2x1
jax: 0.10.0
libtpu: 0.0.40
codegen_flags: <defaults>
</compile_context>

<pallas_src>
import numpy as np
import jax
import jax.numpy as jnp
from jax.experimental import pallas as pl
from jax.experimental.pallas import tpu as pltpu

N_NODE = 16
N_HIDDEN_LAYER = 4
N_FEAT = 14

# A^T (10,4): rows 0:4 = I4 (-> v^2 features), rows 4:10 = difference stencils
# ordered exactly like the reference poly columns 4..13.
_PAIRS = [(0, 1), (1, 2), (2, 3), (0, 2), (1, 3), (0, 3)]
_AT = np.zeros((10, 4), np.float32)
_AT[:4, :4] = np.eye(4, dtype=np.float32)
for _r, (_i, _j) in enumerate(_PAIRS, start=4):
    _AT[_r, _i] = 1.0
    _AT[_r, _j] = -1.0

# Batch-tile policy:
#   - never split batches below _SPLIT_TB lanes (per-step pipeline overhead
#     ~0.35 us would dominate),
#   - otherwise target ~4 grid steps (>=2 so the batch axis shards across the
#     two v7x TensorCores), capped at _MAX_TB lanes (double-buffered tiles +
#     in-kernel f32 temporaries stay ~12-14 MiB, safe on every generation).
_SPLIT_TB = 8 * 1024
_MAX_TB = 32 * 1024
_TARGET_STEPS = 4
_VMEM_LIMIT = 32 * 1024 * 1024   # raise v5e's 16 MiB scoped default; <= physical everywhere


def _round_up(n, m):
    return ((n + m - 1) // m) * m


def _choose_tile(B):
    Bp128 = max(128, _round_up(B, 128))
    if Bp128 <= _SPLIT_TB:
        TB = Bp128
    else:
        TB = _round_up(-(-Bp128 // _TARGET_STEPS), 128)
        TB = max(_SPLIT_TB, min(_MAX_TB, TB))
    Bp = _round_up(Bp128, TB)
    return TB, Bp


def _elu(x):
    # ELU(alpha=1) as max(x, exp(min(x,0)) - 1): identical to the where-form
    # (<= 1 ulp near 0), one fewer VPU op.
    return jnp.maximum(x, jnp.exp(jnp.minimum(x, 0.0)) - 1.0)


def bpmq_kernel(scal_ref,      # SMEM (8,): [cal0..3, kq, bo, 0, 0]
                data_ref,      # VMEM (6, TB): rows 0:4 = bpm_U^T, 4 = x, 5 = y
                slab_ref,      # VMEM (144, 16): packed params (see pack_params)
                o_ref):        # VMEM (5, TB): rows 0:4 = u^T, row 4 = Q
    uT = data_ref[0:4, :]                                      # (4, TB)
    x = data_ref[4:5, :]                                       # (1, TB)
    y = data_ref[5:6, :]                                       # (1, TB)

    # Per-batch-element normalization (per lane); exact divide once on (1,TB),
    # then a single (4,TB) multiply.
    inv = 1.0 / jnp.sum(uT, axis=0, keepdims=True)             # (1, TB)
    un = uT * inv                                              # (4, TB)

    # Calibrated u rows via SMEM scalars (u is only needed for the output and
    # the Qtheory linear term; the NN path has cal folded into its weights).
    u0 = scal_ref[0] * un[0:1, :]
    u1 = scal_ref[1] * un[1:2, :]
    u2 = scal_ref[2] * un[2:3, :]
    u3 = scal_ref[3] * un[3:4, :]

    qtheory = scal_ref[4] * (u1 + u2 - u0 - u3) - (x * x - y * y)   # (1, TB)

    # Polynomial features folded into layer 1 (4x scale + cal already in the
    # packed weights):  h1 = elu(W1a' @ un + W1b' @ (A'^T un)^2 + b1)
    d = jnp.dot(slab_ref[112:128, 0:4], un,                    # (16, TB), rows 10:16 zero
                preferred_element_type=jnp.float32)
    sq = d * d                                                 # (16, TB)
    h = _elu(
        jnp.dot(slab_ref[0:16, 0:4], un, preferred_element_type=jnp.float32)
        + jnp.dot(slab_ref[16:32, :], sq, preferred_element_type=jnp.float32)
        + slab_ref[96:112, 0:1]
    )                                                          # (16, TB)

    # Hidden layers (statically unrolled): h = elu(wh[i]^T @ h + bh[i])
    for i in range(N_HIDDEN_LAYER):
        h = _elu(
            jnp.dot(slab_ref[32 + 16 * i:48 + 16 * i, :], h,
                    preferred_element_type=jnp.float32)
            + slab_ref[96:112, 1 + i:2 + i]
        )

    # Output projection on the (otherwise idle) MXU: (1,16) @ (16,TB).
    residual = jnp.dot(slab_ref[128:129, :], h,
                       preferred_element_type=jnp.float32) + scal_ref[5]

    o_ref[0:1, :] = u0
    o_ref[1:2, :] = u1
    o_ref[2:3, :] = u2
    o_ref[3:4, :] = u3
    o_ref[4:5, :] = qtheory + residual


def pack_params(params):
    """Pack parameters once (call outside the per-forward path and reuse).

    Returns {"slab": (144,16) f32, "scal": (8,) f32}.
    slab row layout:
      0:16    W1a' = 4 * w1[0:4,:]^T @ diag(cal)   (cols 0:4 used)
      16:32   W1b' = 16 * w1[4:14,:]^T             (cols 0:10 used)
      32:96   wh[0..3]^T, 16 rows each
      96:112  column block: col0 = b1, cols 1..4 = bh[i]
      112:128 A'^T = A^T @ diag(cal)               (rows 0:10, cols 0:4)
      128:144 row 0 = wo (16 lanes)
    scal = [cal0, cal1, cal2, cal3, 241*(1+0.1*gc), bo, 0, 0]
    """
    f32 = jnp.float32
    pc = params["pickup_calibration"].astype(f32)
    gc = params["geometry_calibration"].astype(f32)
    c = jnp.concatenate([pc, -jnp.sum(pc, keepdims=True)])      # (4,)
    cal = 1.0 + 0.01 * c                                        # (4,)
    kq = 241.0 * (1.0 + 0.1 * gc[0])

    w1 = params["w1"].astype(f32)                               # (14,16)
    b1 = params["b1"].astype(f32).reshape(N_NODE)
    wh = params["wh"].astype(f32)                               # (4,16,16)
    bh = params["bh"].astype(f32)                               # (4,16)
    wo = params["wo"].astype(f32).reshape(N_NODE)
    bo = params["bo"].astype(f32).reshape(())

    w1a = 4.0 * (w1[:4, :].T * cal[None, :])                    # (16,4)
    w1b = 16.0 * w1[4:14, :].T                                  # (16,10)
    atc = jnp.asarray(_AT) * cal[None, :]                       # (10,4)

    blk_w1a = jnp.zeros((16, 16), f32).at[:, :4].set(w1a)
    blk_w1b = jnp.zeros((16, 16), f32).at[:, :10].set(w1b)
    blk_wh = [wh[i].T for i in range(N_HIDDEN_LAYER)]
    cb = jnp.zeros((16, 16), f32).at[:, 0].set(b1)
    for i in range(N_HIDDEN_LAYER):
        cb = cb.at[:, 1 + i].set(bh[i])
    blk_at = jnp.zeros((16, 16), f32).at[:10, :4].set(atc)
    blk_wo = jnp.zeros((16, 16), f32).at[0, :].set(wo)

    slab = jnp.concatenate([blk_w1a, blk_w1b] + blk_wh + [cb, blk_at, blk_wo],
                           axis=0)                              # (144,16)
    scal = jnp.zeros((8,), f32).at[0:4].set(cal).at[4].set(kq).at[5].set(bo)
    return {"slab": slab, "scal": scal}


def bpmq_forward(packed, bpm_U, bpm_x, bpm_y):
    """Forward pass. `packed` = pack_params(params) (pack once, reuse)."""
    f32 = jnp.float32
    B = bpm_U.shape[0]
    TB, Bp = _choose_tile(B)
    pad = Bp - B

    # Single marshaling pass: one concat (carries the 4-row transpose) + one
    # pad.  Padded columns get 1.0 so the normalization stays finite.
    data = jnp.concatenate([bpm_U.astype(f32).T,
                            bpm_x.astype(f32)[None, :],
                            bpm_y.astype(f32)[None, :]], axis=0)   # (6, B)
    if pad:
        data = jnp.pad(data, ((0, 0), (0, pad)), constant_values=1.0)

    grid = (Bp // TB,)
    out = pl.pallas_call(
        bpmq_kernel,
        out_shape=jax.ShapeDtypeStruct((5, Bp), f32),
        grid_spec=pltpu.PrefetchScalarGridSpec(
            num_scalar_prefetch=0,
            grid=grid,
            in_specs=[
                pl.BlockSpec(memory_space=pltpu.MemorySpace.SMEM),  # scal (8,)
                pl.BlockSpec((6, TB), lambda i: (0, i)),            # runtime data
                pl.BlockSpec((144, 16), lambda i: (0, 0)),          # params stay resident
            ],
            out_specs=pl.BlockSpec((5, TB), lambda i: (0, i)),      # merged u/Q output
        ),
        compiler_params=pltpu.CompilerParams(
            dimension_semantics=("parallel",),    # shards batch over TCs on v7x
            vmem_limit_bytes=_VMEM_LIMIT),
    )(packed["scal"], data, packed["slab"])

    # Back to the PyTorch (B, F) convention.
    return out[0:4, :B].T, out[4, :B]


def init_params(key):
    """Deterministic synthetic parameters matching BPMQ_model.__init__ shapes."""
    keys = jax.random.split(key, 2 + 2 + 2 * N_HIDDEN_LAYER + 2 + 2)
    it = iter(keys)

    def linear(fan_in, fan_out):
        k = 1.0 / np.sqrt(fan_in)
        w = jax.random.uniform(next(it), (fan_in, fan_out), jnp.float32, -k, k)
        b = jax.random.uniform(next(it), (fan_out,), jnp.float32, -k, k)
        return w, b

    w1, b1 = linear(N_FEAT, N_NODE)
    wh_list, bh_list = [], []
    for _ in range(N_HIDDEN_LAYER):
        w, b = linear(N_NODE, N_NODE)
        wh_list.append(w)
        bh_list.append(b)
    wo, bo = linear(N_NODE, 1)

    # Module __init__ uses zeros; use small nonzero values so the calibration
    # path is exercised (still deterministic).
    pickup = 0.1 * jax.random.normal(next(it), (3,), jnp.float32)
    geom = 0.1 * jax.random.normal(next(it), (1,), jnp.float32)

    return {
        "pickup_calibration": pickup,
        "geometry_calibration": geom,
        "w1": w1, "b1": b1.reshape(1, N_NODE),
        "wh": jnp.stack(wh_list), "bh": jnp.stack(bh_list),
        "wo": wo, "bo": bo.reshape(1, 1),
    }


def bpmq_reference(params, bpm_U, bpm_x, bpm_y):
    """Pure-JAX reference mirroring the PyTorch forward."""
    pc = params["pickup_calibration"]
    gc = params["geometry_calibration"]
    bpm_U = bpm_U.astype(jnp.float32)
    c = jnp.concatenate([pc, -jnp.sum(pc, keepdims=True)])
    U = bpm_U / jnp.sum(bpm_U, axis=1, keepdims=True)
    u = (1.0 + 0.01 * c[None, :]) * U
    Qtheory = (1.0 + 0.1 * gc[0]) * 241.0 * (
        u[:, 1] + u[:, 2] - (u[:, 0] + u[:, 3])
    ) - (bpm_x ** 2 - bpm_y ** 2)
    v = 4.0 * u
    poly = jnp.concatenate(
        [v, v ** 2, (v[:, :3] - v[:, 1:]) ** 2,
         (v[:, :2] - v[:, 2:]) ** 2, (v[:, :1] - v[:, 3:]) ** 2],
        axis=1,
    )
    h = jax.nn.elu(poly @ params["w1"] + params["b1"])
    for i in range(N_HIDDEN_LAYER):
        h = jax.nn.elu(h @ params["wh"][i] + params["bh"][i])
    r = (h @ params["wo"] + params["bo"]).reshape(-1)
    return u, Qtheory + r


if __name__ == "__main__":
    key = jax.random.PRNGKey(0)
    kp, ku, kx, ky = jax.random.split(key, 4)

    B = 8
    params = init_params(kp)
    bpm_U = jax.random.uniform(ku, (B, 4), jnp.float32, 0.5, 1.5)
    bpm_x = jax.random.normal(kx, (B,), jnp.float32)
    bpm_y = jax.random.normal(ky, (B,), jnp.float32)

    # Parameter packing is hoisted out of the per-call path (pack once, reuse).
    packed = jax.tree_util.tree_map(jnp.asarray, pack_params(params))

    fwd = jax.jit(bpmq_forward)
    u_k, q_k = fwd(packed, bpm_U, bpm_x, bpm_y)
    jax.block_until_ready((u_k, q_k))

    u_r, q_r = bpmq_reference(params, bpm_U, bpm_x, bpm_y)
    np.testing.assert_allclose(np.asarray(u_k), np.asarray(u_r), rtol=1e-5, atol=1e-5)
    np.testing.assert_allclose(np.asarray(q_k), np.asarray(q_r), rtol=1e-4, atol=1e-4)

    print("KERNEL_OK")
</pallas_src>

<mosaic_0001>
module attributes {stable_mosaic.version = 11 : i64} {
  func.func @bpmq_kernel(%arg0: i32, %arg1: memref<8xf32, #tpu.memory_space<smem>>, %arg2: memref<6x128xf32, #tpu.memory_space<vmem>>, %arg3: memref<144x16xf32, #tpu.memory_space<vmem>>, %arg4: memref<5x128xf32, #tpu.memory_space<vmem>>) attributes {dimension_semantics = [#tpu.dimension_semantics<parallel>], iteration_bounds = array<i64: 1>, scalar_prefetch = 0 : i64, scratch_operands = 0 : i64, tpu.core_type = #tpu.core_type<tc>, window_params = [{transform_indices = @transform_0, window_bounds = array<i64: 8>}, {transform_indices = @transform_1, window_bounds = array<i64: 6, 128>}, {pipeline_mode = #tpu.pipeline_mode<synchronous>, transform_indices = @transform_2, window_bounds = array<i64: 144, 16>}, {transform_indices = @transform_3, window_bounds = array<i64: 5, 128>}]} {
    %c0 = arith.constant 0 : index
    %c0_0 = arith.constant 0 : index
    %0 = vector.load %arg2[%c0, %c0_0] : memref<6x128xf32, #tpu.memory_space<vmem>>, vector<4x128xf32>
    %c4 = arith.constant 4 : index
    %c0_1 = arith.constant 0 : index
    %1 = vector.load %arg2[%c4, %c0_1] : memref<6x128xf32, #tpu.memory_space<vmem>>, vector<1x128xf32>
    %c5 = arith.constant 5 : index
    %c0_2 = arith.constant 0 : index
    %2 = vector.load %arg2[%c5, %c0_2] : memref<6x128xf32, #tpu.memory_space<vmem>>, vector<1x128xf32>
    %cst = arith.constant dense<0.000000e+00> : vector<128xf32>
    %3 = vector.multi_reduction <add>, %0, %cst [0] : vector<4x128xf32> to vector<128xf32>
    %4 = vector.shape_cast %3 : vector<128xf32> to vector<1x128xf32>
    %cst_3 = arith.constant 1.000000e+00 : f32
    %5 = vector.broadcast %cst_3 : f32 to vector<1x128xf32>
    %6 = arith.divf %5, %4 : vector<1x128xf32>
    %7 = vector.broadcast %6 : vector<1x128xf32> to vector<4x128xf32>
    %8 = arith.mulf %0, %7 : vector<4x128xf32>
    %c0_4 = arith.constant 0 : index
    %9 = memref.load %arg1[%c0_4] : memref<8xf32, #tpu.memory_space<smem>>
    %10 = vector.extract_strided_slice %8 {offsets = [0, 0], sizes = [1, 128], strides = [1, 1]} : vector<4x128xf32> to vector<1x128xf32>
    %11 = vector.broadcast %9 : f32 to vector<1x128xf32>
    %12 = arith.mulf %11, %10 : vector<1x128xf32>
    %c1 = arith.constant 1 : index
    %13 = memref.load %arg1[%c1] : memref<8xf32, #tpu.memory_space<smem>>
    %14 = vector.extract_strided_slice %8 {offsets = [1, 0], sizes = [1, 128], strides = [1, 1]} : vector<4x128xf32> to vector<1x128xf32>
    %15 = vector.broadcast %13 : f32 to vector<1x128xf32>
    %16 = arith.mulf %15, %14 : vector<1x128xf32>
    %c2 = arith.constant 2 : index
    %17 = memref.load %arg1[%c2] : memref<8xf32, #tpu.memory_space<smem>>
    %18 = vector.extract_strided_slice %8 {offsets = [2, 0], sizes = [1, 128], strides = [1, 1]} : vector<4x128xf32> to vector<1x128xf32>
    %19 = vector.broadcast %17 : f32 to vector<1x128xf32>
    %20 = arith.mulf %19, %18 : vector<1x128xf32>
    %c3 = arith.constant 3 : index
    %21 = memref.load %arg1[%c3] : memref<8xf32, #tpu.memory_space<smem>>
    %22 = vector.extract_strided_slice %8 {offsets = [3, 0], sizes = [1, 128], strides = [1, 1]} : vector<4x128xf32> to vector<1x128xf32>
    %23 = vector.broadcast %21 : f32 to vector<1x128xf32>
    %24 = arith.mulf %23, %22 : vector<1x128xf32>
    %c4_5 = arith.constant 4 : index
    %25 = memref.load %arg1[%c4_5] : memref<8xf32, #tpu.memory_space<smem>>
    %26 = arith.addf %16, %20 : vector<1x128xf32>
    %27 = arith.subf %26, %12 : vector<1x128xf32>
    %28 = arith.subf %27, %24 : vector<1x128xf32>
    %29 = vector.broadcast %25 : f32 to vector<1x128xf32>
    %30 = arith.mulf %29, %28 : vector<1x128xf32>
    %31 = arith.mulf %1, %1 : vector<1x128xf32>
    %32 = arith.mulf %2, %2 : vector<1x128xf32>
    %33 = arith.subf %31, %32 : vector<1x128xf32>
    %34 = arith.subf %30, %33 : vector<1x128xf32>
    %c112 = arith.constant 112 : index
    %c0_6 = arith.constant 0 : index
    %35 = vector.load %arg3[%c112, %c0_6] : memref<144x16xf32, #tpu.memory_space<vmem>>, vector<16x4xf32>
    %cst_7 = arith.constant dense<0.000000e+00> : vector<16x128xf32>
    %36 = tpu.matmul %35, %8, %cst_7 {dimension_numbers = #tpu.dot_dimension_numbers<[1], [0], [0], [1], [0, 0, 1, 1], [], []>} : vector<16x4xf32>, vector<4x128xf32>, vector<16x128xf32> -> vector<16x128xf32>
    %37 = arith.mulf %36, %36 : vector<16x128xf32>
    %c0_8 = arith.constant 0 : index
    %c0_9 = arith.constant 0 : index
    %38 = vector.load %arg3[%c0_8, %c0_9] : memref<144x16xf32, #tpu.memory_space<vmem>>, vector<16x4xf32>
    %cst_10 = arith.constant dense<0.000000e+00> : vector<16x128xf32>
    %39 = tpu.matmul %38, %8, %cst_10 {dimension_numbers = #tpu.dot_dimension_numbers<[1], [0], [0], [1], [0, 0, 1, 1], [], []>} : vector<16x4xf32>, vector<4x128xf32>, vector<16x128xf32> -> vector<16x128xf32>
    %c16 = arith.constant 16 : index
    %c0_11 = arith.constant 0 : index
    %40 = vector.load %arg3[%c16, %c0_11] : memref<144x16xf32, #tpu.memory_space<vmem>>, vector<16x16xf32>
    %cst_12 = arith.constant dense<0.000000e+00> : vector<16x128xf32>
    %41 = tpu.matmul %40, %37, %cst_12 {dimension_numbers = #tpu.dot_dimension_numbers<[1], [0], [0], [1], [0, 0, 1, 1], [], []>} : vector<16x16xf32>, vector<16x128xf32>, vector<16x128xf32> -> vector<16x128xf32>
    %42 = arith.addf %39, %41 : vector<16x128xf32>
    %c96 = arith.constant 96 : index
    %c0_13 = arith.constant 0 : index
    %43 = vector.load %arg3[%c96, %c0_13] : memref<144x16xf32, #tpu.memory_space<vmem>>, vector<16x1xf32>
    %44 = vector.broadcast %43 : vector<16x1xf32> to vector<16x128xf32>
    %45 = arith.addf %42, %44 : vector<16x128xf32>
    %cst_14 = arith.constant 0.000000e+00 : f32
    %46 = vector.broadcast %cst_14 : f32 to vector<16x128xf32>
    %47 = arith.minimumf %45, %46 : vector<16x128xf32>
    %48 = math.exp %47 : vector<16x128xf32>
    %cst_15 = arith.constant 1.000000e+00 : f32
    %49 = vector.broadcast %cst_15 : f32 to vector<16x128xf32>
    %50 = arith.subf %48, %49 : vector<16x128xf32>
    %51 = arith.maximumf %45, %50 : vector<16x128xf32>
    %c32 = arith.constant 32 : index
    %c0_16 = arith.constant 0 : index
    %52 = vector.load %arg3[%c32, %c0_16] : memref<144x16xf32, #tpu.memory_space<vmem>>, vector<16x16xf32>
    %cst_17 = arith.constant dense<0.000000e+00> : vector<16x128xf32>
    %53 = tpu.matmul %52, %51, %cst_17 {dimension_numbers = #tpu.dot_dimension_numbers<[1], [0], [0], [1], [0, 0, 1, 1], [], []>} : vector<16x16xf32>, vector<16x128xf32>, vector<16x128xf32> -> vector<16x128xf32>
    %c96_18 = arith.constant 96 : index
    %c1_19 = arith.constant 1 : index
    %54 = vector.load %arg3[%c96_18, %c1_19] : memref<144x16xf32, #tpu.memory_space<vmem>>, vector<16x1xf32>
    %55 = vector.broadcast %54 : vector<16x1xf32> to vector<16x128xf32>
    %56 = arith.addf %53, %55 : vector<16x128xf32>
    %cst_20 = arith.constant 0.000000e+00 : f32
    %57 = vector.broadcast %cst_20 : f32 to vector<16x128xf32>
    %58 = arith.minimumf %56, %57 : vector<16x128xf32>
    %59 = math.exp %58 : vector<16x128xf32>
    %cst_21 = arith.constant 1.000000e+00 : f32
    %60 = vector.broadcast %cst_21 : f32 to vector<16x128xf32>
    %61 = arith.subf %59, %60 : vector<16x128xf32>
    %62 = arith.maximumf %56, %61 : vector<16x128xf32>
    %c48 = arith.constant 48 : index
    %c0_22 = arith.constant 0 : index
    %63 = vector.load %arg3[%c48, %c0_22] : memref<144x16xf32, #tpu.memory_space<vmem>>, vector<16x16xf32>
    %cst_23 = arith.constant dense<0.000000e+00> : vector<16x128xf32>
    %64 = tpu.matmul %63, %62, %cst_23 {dimension_numbers = #tpu.dot_dimension_numbers<[1], [0], [0], [1], [0, 0, 1, 1], [], []>} : vector<16x16xf32>, vector<16x128xf32>, vector<16x128xf32> -> vector<16x128xf32>
    %c96_24 = arith.constant 96 : index
    %c2_25 = arith.constant 2 : index
    %65 = vector.load %arg3[%c96_24, %c2_25] : memref<144x16xf32, #tpu.memory_space<vmem>>, vector<16x1xf32>
    %66 = vector.broadcast %65 : vector<16x1xf32> to vector<16x128xf32>
    %67 = arith.addf %64, %66 : vector<16x128xf32>
    %cst_26 = arith.constant 0.000000e+00 : f32
    %68 = vector.broadcast %cst_26 : f32 to vector<16x128xf32>
    %69 = arith.minimumf %67, %68 : vector<16x128xf32>
    %70 = math.exp %69 : vector<16x128xf32>
    %cst_27 = arith.constant 1.000000e+00 : f32
    %71 = vector.broadcast %cst_27 : f32 to vector<16x128xf32>
    %72 = arith.subf %70, %71 : vector<16x128xf32>
    %73 = arith.maximumf %67, %72 : vector<16x128xf32>
    %c64 = arith.constant 64 : index
    %c0_28 = arith.constant 0 : index
    %74 = vector.load %arg3[%c64, %c0_28] : memref<144x16xf32, #tpu.memory_space<vmem>>, vector<16x16xf32>
    %cst_29 = arith.constant dense<0.000000e+00> : vector<16x128xf32>
    %75 = tpu.matmul %74, %73, %cst_29 {dimension_numbers = #tpu.dot_dimension_numbers<[1], [0], [0], [1], [0, 0, 1, 1], [], []>} : vector<16x16xf32>, vector<16x128xf32>, vector<16x128xf32> -> vector<16x128xf32>
    %c96_30 = arith.constant 96 : index
    %c3_31 = arith.constant 3 : index
    %76 = vector.load %arg3[%c96_30, %c3_31] : memref<144x16xf32, #tpu.memory_space<vmem>>, vector<16x1xf32>
    %77 = vector.broadcast %76 : vector<16x1xf32> to vector<16x128xf32>
    %78 = arith.addf %75, %77 : vector<16x128xf32>
    %cst_32 = arith.constant 0.000000e+00 : f32
    %79 = vector.broadcast %cst_32 : f32 to vector<16x128xf32>
    %80 = arith.minimumf %78, %79 : vector<16x128xf32>
    %81 = math.exp %80 : vector<16x128xf32>
    %cst_33 = arith.constant 1.000000e+00 : f32
    %82 = vector.broadcast %cst_33 : f32 to vector<16x128xf32>
    %83 = arith.subf %81, %82 : vector<16x128xf32>
    %84 = arith.maximumf %78, %83 : vector<16x128xf32>
    %c80 = arith.constant 80 : index
    %c0_34 = arith.constant 0 : index
    %85 = vector.load %arg3[%c80, %c0_34] : memref<144x16xf32, #tpu.memory_space<vmem>>, vector<16x16xf32>
    %cst_35 = arith.constant dense<0.000000e+00> : vector<16x128xf32>
    %86 = tpu.matmul %85, %84, %cst_35 {dimension_numbers = #tpu.dot_dimension_numbers<[1], [0], [0], [1], [0, 0, 1, 1], [], []>} : vector<16x16xf32>, vector<16x128xf32>, vector<16x128xf32> -> vector<16x128xf32>
    %c96_36 = arith.constant 96 : index
    %c4_37 = arith.constant 4 : index
    %87 = vector.load %arg3[%c96_36, %c4_37] : memref<144x16xf32, #tpu.memory_space<vmem>>, vector<16x1xf32>
    %88 = vector.broadcast %87 : vector<16x1xf32> to vector<16x128xf32>
    %89 = arith.addf %86, %88 : vector<16x128xf32>
    %cst_38 = arith.constant 0.000000e+00 : f32
    %90 = vector.broadcast %cst_38 : f32 to vector<16x128xf32>
    %91 = arith.minimumf %89, %90 : vector<16x128xf32>
    %92 = math.exp %91 : vector<16x128xf32>
    %cst_39 = arith.constant 1.000000e+00 : f32
    %93 = vector.broadcast %cst_39 : f32 to vector<16x128xf32>
    %94 = arith.subf %92, %93 : vector<16x128xf32>
    %95 = arith.maximumf %89, %94 : vector<16x128xf32>
    %c128 = arith.constant 128 : index
    %c0_40 = arith.constant 0 : index
    %96 = vector.load %arg3[%c128, %c0_40] : memref<144x16xf32, #tpu.memory_space<vmem>>, vector<1x16xf32>
    %cst_41 = arith.constant dense<0.000000e+00> : vector<1x128xf32>
    %97 = tpu.matmul %96, %95, %cst_41 {dimension_numbers = #tpu.dot_dimension_numbers<[1], [0], [0], [1], [0, 0, 1, 1], [], []>} : vector<1x16xf32>, vector<16x128xf32>, vector<1x128xf32> -> vector<1x128xf32>
    %c5_42 = arith.constant 5 : index
    %98 = memref.load %arg1[%c5_42] : memref<8xf32, #tpu.memory_space<smem>>
    %99 = vector.broadcast %98 : f32 to vector<1x128xf32>
    %100 = arith.addf %97, %99 : vector<1x128xf32>
    %c0_43 = arith.constant 0 : index
    %c0_44 = arith.constant 0 : index
    %101 = vector.load %arg4[%c0_43, %c0_44] : memref<5x128xf32, #tpu.memory_space<vmem>>, vector<1x128xf32>
    tpu.vector_store %arg4[%c0_43, %c0_44], %12 {strides = array<i32>} : memref<5x128xf32, #tpu.memory_space<vmem>>, vector<1x128xf32>,
    %c1_45 = arith.constant 1 : index
    %c0_46 = arith.constant 0 : index
    %102 = vector.load %arg4[%c1_45, %c0_46] : memref<5x128xf32, #tpu.memory_space<vmem>>, vector<1x128xf32>
    tpu.vector_store %arg4[%c1_45, %c0_46], %16 {strides = array<i32>} : memref<5x128xf32, #tpu.memory_space<vmem>>, vector<1x128xf32>,
    %c2_47 = arith.constant 2 : index
    %c0_48 = arith.constant 0 : index
    %103 = vector.load %arg4[%c2_47, %c0_48] : memref<5x128xf32, #tpu.memory_space<vmem>>, vector<1x128xf32>
    tpu.vector_store %arg4[%c2_47, %c0_48], %20 {strides = array<i32>} : memref<5x128xf32, #tpu.memory_space<vmem>>, vector<1x128xf32>,
    %c3_49 = arith.constant 3 : index
    %c0_50 = arith.constant 0 : index
    %104 = vector.load %arg4[%c3_49, %c0_50] : memref<5x128xf32, #tpu.memory_space<vmem>>, vector<1x128xf32>
    tpu.vector_store %arg4[%c3_49, %c0_50], %24 {strides = array<i32>} : memref<5x128xf32, #tpu.memory_space<vmem>>, vector<1x128xf32>,
    %105 = arith.addf %34, %100 : vector<1x128xf32>
    %c4_51 = arith.constant 4 : index
    %c0_52 = arith.constant 0 : index
    %106 = vector.load %arg4[%c4_51, %c0_52] : memref<5x128xf32, #tpu.memory_space<vmem>>, vector<1x128xf32>
    tpu.vector_store %arg4[%c4_51, %c0_52], %105 {strides = array<i32>} : memref<5x128xf32, #tpu.memory_space<vmem>>, vector<1x128xf32>,
    return
  }
  func.func @transform_0(%arg0: i32) -> i32 {
    %c0_i32 = arith.constant 0 : i32
    %c0_i32_0 = arith.constant 0 : i32
    return %c0_i32 : i32
  }
  func.func @transform_1(%arg0: i32) -> (i32, i32) {
    %c0_i32 = arith.constant 0 : i32
    %c0_i32_0 = arith.constant 0 : i32
    return %c0_i32, %arg0 : i32, i32
  }
  func.func @transform_2(%arg0: i32) -> (i32, i32) {
    %c0_i32 = arith.constant 0 : i32
    %c0_i32_0 = arith.constant 0 : i32
    %c0_i32_1 = arith.constant 0 : i32
    return %c0_i32, %c0_i32_0 : i32, i32
  }
  func.func @transform_3(%arg0: i32) -> (i32, i32) {
    %c0_i32 = arith.constant 0 : i32
    %c0_i32_0 = arith.constant 0 : i32
    return %c0_i32, %arg0 : i32, i32
  }
}

</mosaic_0001>

<bundles_post_ra>
// kernel: bpmq_forward.1
= control target key start
LH: loop header
LB: loop body
LE: loop exit
PB: predicated region body
PF: predicated region fallthrough
CT: control target
= control target key end

     0   :  { %8 = vsyncpa [#allocation3], 0  ;;  %s1191_s0 = inlined_call_operand.vmem [shape: f32[8], index: 0, kind: input, shape index: {}]   ;;  %s1192_s1 = inlined_call_operand.vmem [shape: f32[6,128], index: 1, kind: input, shape index: {}]   ;;  %s1193_s2 = inlined_call_operand.vmem [shape: f32[144,16], index: 2, kind: input, shape index: {}]   ;;  %s1194_s3 = inlined_call_operand.vmem [shape: f32[5,128], index: 3, kind: output, shape index: {}]  }
   0x1   :  { %s15_s14 = sshll.u32 %s1191_s0, 4  ;;  %s16_s14 = int_to_ptr.vmem [resolvable:$true] %s15_s14 }
   0x2   :  { %s1026_s15 = scalar_lea.vmem %s16_s14, 16  ;;  %p1031_p1 = scmp.lt.s32.totalorder %s16_s14, %s16_s14 }
   0x3   :  { %p1027_p0 = scmp.ne.s32.totalorder %s16_s14, %s1026_s15  ;;  %p1032_p2 = scmp.lt.s32.totalorder %s1026_s15, %s1026_s15 }
   0x5   :  { %p1033_p3 = por %p1032_p2, %p1031_p1 }
   0x7   :  { %p1034_p4 = pnand %p1033_p3, %p1027_p0 }
   0x9   :  { %1037 = shalt.err (!%p1034_p4)
}
   0xa   :  { %s1040_s16 = smov [#allocation2]  }
   0xb   :  { %18 = dma.vmem_to_smem %s16_s14, 16, %s1040_s16, [#allocation3]  }
   0xc   :  { %1038 = dma.done.wait [#allocation3], 16  }
   0xd   :  { %1039 = vsyncadd [#allocation3], 4294967280 }
   0xe   :  { %26 = sfence }
   0xf   :  { %v27_v0 = vld [vmem:[%s1192_s1] sm:$0xf]  ;;  %vm30_vm0 = vcmask 1043456   ;;  %v75_v1 = vld [vmem:[%s1193_s2 + $0x70] sm:$0xff]  ;;  %vm77_vm1 = vcmask 31744   ;;  %v76_v11 = vld [vmem:[%s1193_s2 + $0x78] sm:$0xff] }
  0x10   :  { %v31_v2 = vsel %vm30_vm0, %v27_v0, 0.0  ;;  %912 = vmatprep.mubr.msk.f32.mxu0 %vm77_vm1, %v75_v1  ;;  %v166_v12 = vld [vmem:[%s1193_s2 + $0x10] sm:$0xff]  ;;  %vm168_vm2 = vcmask 130048   ;;  %v1097_v13 = vld [vmem:[%s1193_s2 + $0x60] sm:$0xff]  ;;  %v1041_v14 = vmov 0   ;;  %v1103_v15 = vld [vmem:[%s1193_s2 + $0x68] sm:$0xff] }
  0x11   :  { %v32_v3 = vrot.slane %v31_v2, 4  ;;  %919 = vmatprep.mubr.msk.f32.mxu1 %vm168_vm2, %v166_v12  ;;  %996 = vset.pattern.permute.xlu0 %v1041_v14  ;;  %v167_v21 = vld [vmem:[%s1193_s2 + $0x18] sm:$0xff]  ;;  %v164_v22 = vld [vmem:[%s1193_s2] sm:$0xff]  ;;  %v165_v23 = vld [vmem:[%s1193_s2 + $0x8] sm:$0xff]  ;;  %v1042_v25 = vmov 1   ;;  %v1043_v45 = vmov 2  }
  0x12   :  { %335 = vperm.xlu0 %996, %v1097_v13   ;;  %v355_v24 = vld [vmem:[%s1193_s2 + $0x20] sm:$0xff]  ;;  %997 = vset.pattern.permute.xlu1 %v1042_v25  ;;  %v356_v43 = vld [vmem:[%s1193_s2 + $0x28] sm:$0xff]  ;;  %v456_v44 = vld [vmem:[%s1193_s2 + $0x30] sm:$0xff]  ;;  %v1044_v1 = vmov 3   ;;  %vm1047_vm3 = vmmov 0   ;;  %s41_s22 = sld [smem:[#allocation2]] }
  0x13   :  { %v33_v4 = vadd.f32 %v32_v3, %v31_v2  ;;  %358 = vperm.xlu1 %997, %v1097_v13   ;;  %v457_v63 = vld [vmem:[%s1193_s2 + $0x38] sm:$0xff]  ;;  %s849_s23 = sld [smem:[#allocation2 + $0x1]]  ;;  %s850_s24 = sld [smem:[#allocation2 + $0x2]] }
  0x14   :  { %s851_s25 = sld [smem:[#allocation2 + $0x3]]  ;;  %s852_s13 = sld [smem:[#allocation2 + $0x4]] }
  0x15   :  { %v34_v5 = vrot.slane %v33_v4, 2  ;;  %s879_s14 = sld [smem:[#allocation2 + $0x5]] }
  0x16   :  { %340 = vperm.xlu0 %996, %v1103_v15  }
  0x17   :  { %v35_v6 = vadd.f32 %v34_v5, %v33_v4  ;;  %362 = vperm.xlu1 %997, %v1103_v15  }
  0x19   :  { %v36_v7 = vrot.slane %v35_v6, 1 }
  0x1a   :  { %998 = vset.pattern.permute.xlu0 %v1043_v45 }
  0x1b   :  { %v37_v8 = vadd.f32 %v36_v7, %v35_v6  ;;  %999 = vset.pattern.permute.xlu1 %v1043_v45  ;;  %459 = vperm.xlu0 %998, %v1097_v13   ;;  %v45_v45 = vstv %s849_s23 }
  0x1c   :  { %463 = vperm.xlu1 %999, %v1103_v15  }
  0x1d   :  { %1004 = vrcp.f32 %v37_v8 }
  0x1f   :  { %1001 = vset.pattern.permute.xlu0 %v1044_v1 }
  0x20   :  { %1000 = vset.pattern.permute.xlu1 %v1044_v1  ;;  %564 = vperm.xlu0 %1001, %v1103_v15  }
  0x21   :  { %560 = vperm.xlu1 %1000, %v1097_v13  }
  0x27   :  { %v1005_v9 = vpop.eup %1004 }
  0x28   :  { %v1080_v10 = vmul.f32 %v1005_v9, %v27_v0  ;;  %v557_v0 = vld [vmem:[%s1193_s2 + $0x40] sm:$0xff] }
  0x2a   :  { %910 = vmatprep.subr.msk.mxu0 %vm30_vm0, %v1080_v10 }
  0x2b   :  { %911 = vmatpush3.msk.msra.mxu0 %vm30_vm0, %v1080_v10 }
  0x2c   :  { %913 = vmatmul.mubr.msk.f32.vlgmr.msra.gmra.mrb[0].mxu0 %vm77_vm1, %v76_v11 }
  0x2d   :  { %931 = vmatprep.mubr.msk.f32.mxu0 %vm168_vm2, %v355_v24  ;;  %v1045_v24 = vmov 4  }
  0x2e   :  { %1002 = vset.pattern.permute.xlu1 %v1045_v24  ;;  %1003 = vset.pattern.permute.xlu0 %v1045_v24 }
  0x2f   :  { %661 = vperm.xlu1 %1002, %v1097_v13  }
  0x33   :  { %665 = vperm.xlu1 %1002, %v1103_v15   ;;  %v659_v15 = vld [vmem:[%s1193_s2 + $0x58] sm:$0xff] }
  0x91   :  { %v336_v26 = vpop.permute.xlu0 %335 }
  0x92   :  { %v359_v46 = vpop.permute.xlu1 %358 }
  0x95   :  { %v341_v27 = vpop.permute.xlu0 %340 }
  0x96   :  { %v363_v47 = vpop.permute.xlu1 %362 }
  0x9a   :  { %v460_v3 = vpop.permute.xlu0 %459 }
  0x9b   :  { %v464_v2 = vpop.permute.xlu1 %463 }
  0x9f   :  { %v565_v25 = vpop.permute.xlu0 %564 }
  0xff   :  { %v914_v16 = vpop.f32.mrb[0].mxu0 }
 0x100   :  { %v163_v17 = vmul.f32 %v914_v16, %v914_v16  ;;  %v153_v18 = vpop.f32.mrb[1].mxu0 }
 0x101   :  { %v162_v19 = vmul.f32 %v153_v18, %v153_v18 }
 0x103   :  { %v962_v20 = vpack.c.bf16 %v163_v17, %v162_v19 }
 0x105   :  { %963 = vmatprep.subr.bf16.mxu1 %v962_v20 }
 0x106   :  { %965 = vmatpush3.bf16.msra.mxu1 %v962_v20 }
 0x107   :  { %922 = vmatprep.subr.msk.mxu1 %vm30_vm0, %v1080_v10 }
 0x109   :  { %920 = vmatmul.mubr.msk.f32.vlgmr.msra.gmra.mrb[0].mxu1 %vm168_vm2, %v167_v21 }
 0x10a   :  { %923 = vmatpush3.msk.msra.mxu1 %vm30_vm0, %v1080_v10  ;;  %924 = vmatprep.mubr.msk.f32.mxu1 %vm77_vm1, %v164_v22  ;;  %v558_v22 = vld [vmem:[%s1193_s2 + $0x48] sm:$0xff] }
 0x111   :  { %925 = vmatmul.mubr.msk.f32.vlgmr.msra.gmra.mrb[0].mxu1 %vm77_vm1, %v165_v23  ;;  %v658_v23 = vld [vmem:[%s1193_s2 + $0x50] sm:$0xff] }
 0x112   :  { %945 = vmatprep.mubr.msk.f32.mxu1 %vm168_vm2, %v557_v0 }
 0x1e4   :  { %v926_v28 = vpop.f32.mrb[0].mxu1 }
 0x1e5   :  { %v344_v29 = vadd.f32 %v926_v28, %v341_v27  ;;  %v322_v30 = vpop.f32.mrb[1].mxu1 }
 0x1e6   :  { %v343_v31 = vadd.f32 %v336_v26, %v322_v30  ;;  %v561_v26 = vpop.permute.xlu1 %560 }
 0x1e7   :  { %v346_v32 = vmin.f32 %v344_v29, 0.0 }
 0x1e8   :  { %v345_v33 = vmin.f32 %v343_v31, 0.0 }
 0x1e9   :  { %v349_v34 = vmul.f32 1.442695, %v346_v32 }
 0x1ea   :  { %v347_v35 = vmul.f32 1.442695, %v345_v33 }
 0x1eb   :  { %1006 = vpow2.f32 %v349_v34 }
 0x1ec   :  { %1008 = vpow2.f32 %v347_v35 }
 0x1f5   :  { %v1007_v36 = vpop.eup %1006 }
 0x1f6   :  { %v1009_v37 = vpop.eup %1008  ;;  %v862_v38 = vadd.f32 -1.0, %v1007_v36 }
 0x1f7   :  { %v861_v39 = vadd.f32 -1.0, %v1009_v37 }
 0x1f8   :  { %v354_v40 = vmax.f32 %v344_v29, %v862_v38 }
 0x1f9   :  { %v353_v41 = vmax.f32 %v343_v31, %v861_v39 }
 0x1fb   :  { %v966_v42 = vpack.c.bf16 %v354_v40, %v353_v41  ;;  %v1046_v41 = vmov 0.0|0.0  }
 0x1fd   :  { %967 = vmatprep.subr.bf16.mxu0 %v966_v42 }
 0x1fe   :  { %969 = vmatpush3.bf16.msra.mxu0 %v966_v42  ;;  %v1048_v42 = vmov 0.0  }
 0x201   :  { %932 = vmatmul.mubr.msk.f32.vlgmr.msra.gmra.mrb[2].mxu0 %vm168_vm2, %v356_v43  ;;  %v42_v43 = vstv %s41_s22 }
 0x202   :  { %938 = vmatprep.mubr.msk.f32.mxu0 %vm168_vm2, %v456_v44  ;;  %v43_v44 = vmul.f32 %v42_v43, %v1080_v10 }
 0x204   :  { %835 = vst [vmem:[%s1194_s3] sm:$0x1] %v43_v44 }
 0x2d4   :  { %v933_v48 = vpop.f32.mrb[2].mxu0 }
 0x2d5   :  { %v443_v49 = vadd.f32 %v933_v48, %v363_v47  ;;  %v437_v50 = vpop.f32.mrb[3].mxu0  ;;  %v46_v47 = vmul.f32 %v45_v45, %v1080_v10 }
 0x2d6   :  { %v438_v51 = vadd.f32 %v437_v50, %v359_v46  ;;  %v48_v46 = vstv %s850_s24 }
 0x2d7   :  { %v447_v52 = vmin.f32 %v443_v49, 0.0  ;;  %v49_v48 = vmul.f32 %v48_v46, %v1080_v10  ;;  %836 = vst [vmem:[%s1194_s3] sm:$0x2] %v46_v47 }
 0x2d8   :  { %v446_v53 = vmin.f32 %v438_v51, 0.0 }
 0x2d9   :  { %v450_v54 = vmul.f32 1.442695, %v447_v52  ;;  %v59_v52 = vrot.slane %v43_v44, 7  ;;  %837 = vst [vmem:[%s1194_s3] sm:$0x4] %v49_v48 }
 0x2da   :  { %v448_v55 = vmul.f32 1.442695, %v446_v53 }
 0x2db   :  { %1010 = vpow2.f32 %v450_v54 }
 0x2dc   :  { %1012 = vpow2.f32 %v448_v55 }
 0x2e5   :  { %v1011_v56 = vpop.eup %1010 }
 0x2e6   :  { %v1013_v57 = vpop.eup %1012  ;;  %v866_v58 = vadd.f32 -1.0, %v1011_v56  ;;  %v662_v56 = vpop.permute.xlu1 %661 }
 0x2e7   :  { %v865_v59 = vadd.f32 -1.0, %v1013_v57 }
 0x2e8   :  { %v455_v60 = vmax.f32 %v443_v49, %v866_v58  ;;  %v51_v49 = vstv %s851_s25 }
 0x2e9   :  { %v454_v61 = vmax.f32 %v438_v51, %v865_v59  ;;  %v52_v50 = vmul.f32 %v51_v49, %v1080_v10  ;;  %v55_v51 = vrot.slane %v49_v48, 1 }
 0x2ea   :  { %v666_v57 = vpop.permute.xlu1 %665 }
 0x2eb   :  { %v970_v62 = vpack.c.bf16 %v455_v60, %v454_v61  ;;  %838 = vst [vmem:[%s1194_s3] sm:$0x8] %v52_v50  ;;  %v57_v53 = vadd.f32 %v55_v51, %v46_v47  ;;  %v63_v10 = vrot.slane %v52_v50, 2 }
 0x2ed   :  { %971 = vmatprep.subr.bf16.mxu0 %v970_v62  ;;  %v61_v54 = vsub.f32 %v57_v53, %v59_v52 }
 0x2ee   :  { %973 = vmatpush3.bf16.msra.mxu0 %v970_v62 }
 0x2ef   :  { %v65_v55 = vsub.f32 %v61_v54, %v63_v10 }
 0x2f1   :  { %939 = vmatmul.mubr.msk.f32.vlgmr.msra.gmra.mrb[4].mxu0 %vm168_vm2, %v457_v63 }
 0x2f2   :  { %952 = vmatprep.mubr.msk.f32.mxu0 %vm168_vm2, %v658_v23 }
 0x3c4   :  { %v940_v4 = vpop.f32.mrb[4].mxu0 }
 0x3c5   :  { %v544_v5 = vadd.f32 %v940_v4, %v464_v2  ;;  %v538_v6 = vpop.f32.mrb[5].mxu0 }
 0x3c6   :  { %v539_v7 = vadd.f32 %v538_v6, %v460_v3 }
 0x3c7   :  { %v548_v8 = vmin.f32 %v544_v5, 0.0 }
 0x3c8   :  { %v547_v9 = vmin.f32 %v539_v7, 0.0 }
 0x3c9   :  { %v551_v11 = vmul.f32 1.442695, %v548_v8 }
 0x3ca   :  { %v549_v12 = vmul.f32 1.442695, %v547_v9  ;;  %v759_v9 = vld [vmem:[%s1193_s2 + $0x80] sm:$0x1] }
 0x3cb   :  { %1014 = vpow2.f32 %v551_v11  ;;  %v28_v11 = vld [vmem:[%s1192_s1 + $0x4] sm:$0x1] }
 0x3cc   :  { %1016 = vpow2.f32 %v549_v12  ;;  %v29_v12 = vld [vmem:[%s1192_s1 + $0x5] sm:$0x1] }
 0x3d5   :  { %v1015_v14 = vpop.eup %1014 }
 0x3d6   :  { %v1017_v16 = vpop.eup %1016  ;;  %v870_v17 = vadd.f32 -1.0, %v1015_v14  ;;  %v68_v14 = vmul.f32 %v28_v11, %v28_v11 }
 0x3d7   :  { %v869_v18 = vadd.f32 -1.0, %v1017_v16  ;;  %v69_v16 = vmul.f32 %v29_v12, %v29_v12 }
 0x3d8   :  { %v556_v19 = vmax.f32 %v544_v5, %v870_v17 }
 0x3d9   :  { %v555_v20 = vmax.f32 %v539_v7, %v869_v18  ;;  %v70_v17 = vsub.f32 %v68_v14, %v69_v16  ;;  %v66_v18 = vstv %s852_s13 }
 0x3db   :  { %v974_v21 = vpack.c.bf16 %v556_v19, %v555_v20  ;;  %v67_v19 = vmul.f32 %v66_v18, %v65_v55  ;;  %v72_v20 = vrot.slane %v70_v17, 7 }
 0x3dd   :  { %975 = vmatprep.subr.bf16.mxu1 %v974_v21  ;;  %v74_v23 = vsub.f32 %v67_v19, %v72_v20 }
 0x3de   :  { %977 = vmatpush3.bf16.msra.mxu1 %v974_v21  ;;  %v761_v21 = vstv %s879_s14 }
 0x3df   :  { %982 = vmatprep.subr.bf16.mxu1 %v1046_v41 }
 0x3e1   :  { %946 = vmatmul.mubr.msk.f32.vlgmr.msra.gmra.mrb[2].mxu1 %vm168_vm2, %v558_v22 }
 0x3e2   :  { %959 = vmatprep.mubr.msk.f32.mxu1 %vm1047_vm3, %v1048_v42 }
 0x4b4   :  { %v947_v27 = vpop.f32.mrb[2].mxu1 }
 0x4b5   :  { %v645_v28 = vadd.f32 %v947_v27, %v565_v25  ;;  %v639_v29 = vpop.f32.mrb[3].mxu1 }
 0x4b6   :  { %v640_v30 = vadd.f32 %v639_v29, %v561_v26 }
 0x4b7   :  { %v649_v31 = vmin.f32 %v645_v28, 0.0 }
 0x4b8   :  { %v648_v32 = vmin.f32 %v640_v30, 0.0 }
 0x4b9   :  { %v652_v33 = vmul.f32 1.442695, %v649_v31 }
 0x4ba   :  { %v650_v34 = vmul.f32 1.442695, %v648_v32 }
 0x4bb   :  { %1018 = vpow2.f32 %v652_v33 }
 0x4bc   :  { %1020 = vpow2.f32 %v650_v34 }
 0x4c5   :  { %v1019_v35 = vpop.eup %1018 }
 0x4c6   :  { %v1021_v36 = vpop.eup %1020  ;;  %v874_v37 = vadd.f32 -1.0, %v1019_v35 }
 0x4c7   :  { %v873_v38 = vadd.f32 -1.0, %v1021_v36 }
 0x4c8   :  { %v657_v39 = vmax.f32 %v645_v28, %v874_v37 }
 0x4c9   :  { %v656_v13 = vmax.f32 %v640_v30, %v873_v38 }
 0x4cb   :  { %v978_v40 = vpack.c.bf16 %v657_v39, %v656_v13 }
 0x4cd   :  { %979 = vmatprep.subr.bf16.mxu0 %v978_v40 }
 0x4ce   :  { %981 = vmatpush3.bf16.msra.mxu0 %v978_v40 }
 0x4d1   :  { %953 = vmatmul.mubr.msk.f32.vlgmr.msra.gmra.mrb[6].mxu0 %vm168_vm2, %v659_v15 }
 0x5a4   :  { %v954_v58 = vpop.f32.mrb[6].mxu0 }
 0x5a5   :  { %v746_v59 = vadd.f32 %v954_v58, %v666_v57  ;;  %v740_v60 = vpop.f32.mrb[7].mxu0 }
 0x5a6   :  { %v741_v61 = vadd.f32 %v740_v60, %v662_v56 }
 0x5a7   :  { %v750_v62 = vmin.f32 %v746_v59, 0.0 }
 0x5a8   :  { %v749_v63 = vmin.f32 %v741_v61, 0.0 }
 0x5a9   :  { %v753_v0 = vmul.f32 1.442695, %v750_v62 }
 0x5aa   :  { %v751_v1 = vmul.f32 1.442695, %v749_v63 }
 0x5ab   :  { %1022 = vpow2.f32 %v753_v0 }
 0x5ac   :  { %1024 = vpow2.f32 %v751_v1 }
 0x5b5   :  { %v1023_v2 = vpop.eup %1022 }
 0x5b6   :  { %v1025_v3 = vpop.eup %1024  ;;  %v878_v4 = vadd.f32 -1.0, %v1023_v2 }
 0x5b7   :  { %v877_v5 = vadd.f32 -1.0, %v1025_v3 }
 0x5b8   :  { %v758_v6 = vmax.f32 %v746_v59, %v878_v4 }
 0x5b9   :  { %v757_v7 = vmax.f32 %v741_v61, %v877_v5 }
 0x5bb   :  { %v983_v8 = vpack.c.bf16 %v758_v6, %v757_v7 }
 0x5bd   :  { %984 = vmatpush3.bf16.msra.mxu1 %v983_v8 }
 0x5c0   :  { %960 = vmatmul.mubr.msk.f32.vlgmr.msra.gmra.mrb[4].mxu1 %vm168_vm2, %v759_v9 }
 0x693   :  { %v831_v22 = vpop.f32.mrb[4].mxu1 }
 0x694   :  { %v832_v24 = vadd.f32 %v831_v22, %v761_v21  ;;  %v961_v25 = vpop.f32.mrb[5].mxu1 }
 0x696   :  { %v840_v26 = vrot.slane %v832_v24, 7 }
 0x698   :  { %v842_v27 = vadd.f32 %v840_v26, %v74_v23 }
 0x69a   :  { %843 = vst [vmem:[%s1194_s3 + $0x3] sm:$0x2] %v842_v27 }
 0x69b   :  { %848 = vsyncpa [#allocation3], 1 }

</bundles_post_ra>
